<compile_context>
chip_gen: v7x
topology: tpu7x:2x2x1
jax: 0.10.0
libtpu: 0.0.40
codegen_flags: <defaults>
</compile_context>

<pallas_src>
import jax
import jax.numpy as jnp
from jax import lax
from jax.experimental import pallas as pl
from jax.experimental.pallas import tpu as pltpu

EPS = 1e-12            # F.normalize default eps (clamp on the L2 norm)
EPS_SQ = EPS * EPS     # clamp on squared norm so rsqrt == 1 / max(||x||, eps)

# bf16 MXU inputs ~2-4x matmul throughput on v5e/v6e/v7x (accumulation stays f32).
MATMUL_DTYPE = jnp.bfloat16


def _round_up(x, m):
    return ((x + m - 1) // m) * m


# ----------------------------------------------------------------------------
# Embedder kernel: row-tiled  normalize(x @ w + b) * scale
# (scale = 1 for visual tokens, 1/temperature folded into audio tokens)
# ----------------------------------------------------------------------------
def _embed_norm_kernel(scale_ref, x_ref, w_ref, b_ref, o_ref):
    y = jnp.dot(
        x_ref[...].astype(MATMUL_DTYPE),
        w_ref[...].astype(MATMUL_DTYPE),
        preferred_element_type=jnp.float32,
    ) + b_ref[...]
    inv_norm = jax.lax.rsqrt(
        jnp.maximum(jnp.sum(y * y, axis=-1, keepdims=True), EPS_SQ)
    )
    o_ref[...] = y * (inv_norm * scale_ref[0])


def embed_and_normalize(x, w, b, scale, tm=256):
    """x: (M, K) -> (M, D) rows L2-normalized and scaled."""
    M, K = x.shape
    D = w.shape[1]
    tm = min(tm, _round_up(M, 8))
    Mp = _round_up(M, tm)
    if Mp != M:
        x = jnp.pad(x, ((0, Mp - M), (0, 0)))
    out = pl.pallas_call(
        _embed_norm_kernel,
        grid=(Mp // tm,),
        in_specs=[
            pl.BlockSpec(memory_space=pltpu.MemorySpace.SMEM),
            pl.BlockSpec((tm, K), lambda i: (i, 0)),
            pl.BlockSpec((K, D), lambda i: (0, 0)),
            pl.BlockSpec((1, D), lambda i: (0, 0)),
        ],
        out_specs=pl.BlockSpec((tm, D), lambda i: (i, 0)),
        out_shape=jax.ShapeDtypeStruct((Mp, D), jnp.float32),
        compiler_params=pltpu.CompilerParams(dimension_semantics=("parallel",)),
    )(scale, x, w, b.reshape(1, D))
    return out[:M] if Mp != M else out


# ----------------------------------------------------------------------------
# Synthetic embedders (linear patch / frame-wise token embedders)
# ----------------------------------------------------------------------------
def vit_embed(frames, w, b, patch, scale):
    B, C, H, W = frames.shape
    x = frames.reshape(B, C, H // patch, patch, W // patch, patch)
    x = x.transpose(0, 2, 4, 1, 3, 5).reshape(
        B, (H // patch) * (W // patch), C * patch * patch
    )
    Nv = x.shape[1]
    y = embed_and_normalize(x.reshape(-1, x.shape[-1]), w, b, scale)
    return y.reshape(B, Nv, -1)


def ast_embed(spectrograms, w, b, scale):
    B, T, F = spectrograms.shape
    y = embed_and_normalize(spectrograms.reshape(-1, F), w, b, scale)
    return y.reshape(B, T, -1)


# ----------------------------------------------------------------------------
# Training path: all-pairs token similarities, 2-D tiled pure-MXU kernel.
# Inputs are pre-normalized; audio already carries the 1/temperature factor.
# ----------------------------------------------------------------------------
def _all_pairs_kernel(a_ref, v_ref, tok_ref):
    # a_ref: (tm, D), v_ref: (tn, D)  ->  NT matmul, lane-dense (tm, tn) output
    tok_ref[...] = lax.dot_general(
        a_ref[...].astype(MATMUL_DTYPE),
        v_ref[...].astype(MATMUL_DTYPE),
        dimension_numbers=(((1,), (1,)), ((), ())),
        preferred_element_type=jnp.float32,
    )


def compute_all_similarities(audio_norm, visual_norm, tm=512, tn=512):
    B, Na, D = audio_norm.shape
    Nv = visual_norm.shape[1]
    BNa, BNv = B * Na, B * Nv

    a_flat = audio_norm.reshape(BNa, D)
    v_flat = visual_norm.reshape(BNv, D)

    tm = min(tm, _round_up(BNa, 8))
    tn = min(tn, _round_up(BNv, 128))      # lane-dense output tiles
    Ma = _round_up(BNa, tm)
    Mv = _round_up(BNv, tn)
    if Ma != BNa:
        a_flat = jnp.pad(a_flat, ((0, Ma - BNa), (0, 0)))
    if Mv != BNv:
        v_flat = jnp.pad(v_flat, ((0, Mv - BNv), (0, 0)))

    tok_flat = pl.pallas_call(
        _all_pairs_kernel,
        grid=(Ma // tm, Mv // tn),
        in_specs=[
            pl.BlockSpec((tm, D), lambda i, j: (i, 0)),
            pl.BlockSpec((tn, D), lambda i, j: (j, 0)),
        ],
        out_specs=pl.BlockSpec((tm, tn), lambda i, j: (i, j)),
        out_shape=jax.ShapeDtypeStruct((Ma, Mv), jnp.float32),
        compiler_params=pltpu.CompilerParams(
            dimension_semantics=("parallel", "parallel")),
    )(a_flat, v_flat)

    tok_flat = tok_flat[:BNa, :BNv]
    # Keep the matmul layout: token_sims[i, a, j, v]  (no transpose copy).
    token_sims = tok_flat.reshape(B, Na, B, Nv)
    # clip_sims[i, j] = mean_a max_v   (B^2*Na elements -> plain JAX)
    clip_sims = jnp.mean(jnp.max(token_sims, axis=3), axis=1)
    return clip_sims, token_sims


# ----------------------------------------------------------------------------
# Inference path: paired (diagonal) similarity, per-batch tiled; in-kernel
# row-max over Nv (the (B, Na, Nv) sims never touch HBM), mean in JAX.
# ----------------------------------------------------------------------------
def _paired_kernel(a_ref, v_ref, m_ref):
    # a_ref: (1, Na, D), v_ref: (1, Nv, D), m_ref: (1, Na, 1)
    s = lax.dot_general(
        a_ref[0].astype(MATMUL_DTYPE),
        v_ref[0].astype(MATMUL_DTYPE),
        dimension_numbers=(((1,), (1,)), ((), ())),
        preferred_element_type=jnp.float32,
    )                                              # (Na, Nv), already /T
    m_ref[0] = jnp.max(s, axis=1, keepdims=True)   # (Na, 1)


def aggregate_similarities(audio_norm, visual_norm):
    B, Na, D = audio_norm.shape
    Nv = visual_norm.shape[1]
    row_max = pl.pallas_call(
        _paired_kernel,
        grid=(B,),
        in_specs=[
            pl.BlockSpec((1, Na, D), lambda b: (b, 0, 0)),
            pl.BlockSpec((1, Nv, D), lambda b: (b, 0, 0)),
        ],
        out_specs=pl.BlockSpec((1, Na, 1), lambda b: (b, 0, 0)),
        out_shape=jax.ShapeDtypeStruct((B, Na, 1), jnp.float32),
        compiler_params=pltpu.CompilerParams(dimension_semantics=("parallel",)),
    )(audio_norm, visual_norm)
    return jnp.mean(row_max[..., 0], axis=1)       # (B,)


# ----------------------------------------------------------------------------
# Loss glue (tiny reductions, kept in plain JAX).
# token_sims is in (B, Na, B, Nv) layout; last axis is still Nv, so the
# spatial-diff and sparsity terms match the reference exactly.
# ----------------------------------------------------------------------------
def compute_regularization_losses(clip_sims, token_sims, temperature):
    neg_sims = jnp.minimum(token_sims, 0.0)                 # clamp(max=0)
    l_nonneg = jnp.mean(neg_sims ** 2)
    l_cal = jnp.maximum(jnp.log(1.0) - jnp.log(temperature), 0.0) ** 2
    spatial_diffs = token_sims[..., 1:] - token_sims[..., :-1]
    l_spatial = jnp.mean(spatial_diffs ** 2)
    attn_norm = jax.nn.sigmoid(token_sims)
    above_threshold = jax.nn.relu(attn_norm - 0.5)
    num_high_attn = jnp.sum(above_threshold, axis=-1)
    l_sparsity = jnp.mean(jnp.exp(2.0 * num_high_attn))
    return 0.01 * l_nonneg + 0.1 * l_cal + 0.01 * l_spatial + 0.01 * l_sparsity


def compute_contrastive_loss(clip_sims, token_sims, temperature):
    log_prob_a2v = jax.nn.log_softmax(clip_sims, axis=1)
    losses_a2v = -jnp.diag(log_prob_a2v)
    log_prob_v2a = jax.nn.log_softmax(clip_sims.T, axis=1)
    losses_v2a = -jnp.diag(log_prob_v2a)
    contrastive_loss = jnp.mean(losses_a2v + losses_v2a) / 2.0
    reg_loss = compute_regularization_losses(clip_sims, token_sims, temperature)
    return contrastive_loss + reg_loss


# ----------------------------------------------------------------------------
# Model wrapper
# ----------------------------------------------------------------------------
class AudioVisualModelPallas:
    def __init__(self, key, *, img_channels=3, patch=4, spec_bins=16,
                 embed_dim=128, temperature=0.2):
        kv, ka = jax.random.split(key)
        patch_dim = img_channels * patch * patch
        self.patch = patch
        self.w_v = 0.02 * jax.random.normal(kv, (patch_dim, embed_dim), jnp.float32)
        self.b_v = jnp.zeros((embed_dim,), jnp.float32)
        self.w_a = 0.02 * jax.random.normal(ka, (spec_bins, embed_dim), jnp.float32)
        self.b_a = jnp.zeros((embed_dim,), jnp.float32)
        self.temperature = jnp.float32(temperature)

    def forward(self, frames, spectrograms, training=True):
        one = jnp.ones((1,), jnp.float32)
        inv_t = jnp.reshape(1.0 / self.temperature, (1,)).astype(jnp.float32)
        # Tokens come out of the embedder already L2-normalized; the audio
        # tokens additionally carry the 1/temperature factor, so every
        # similarity kernel downstream is a pure matmul.
        visual_feats = vit_embed(frames, self.w_v, self.b_v, self.patch, one)
        audio_feats = ast_embed(spectrograms, self.w_a, self.b_a, inv_t)
        if training:
            clip_sims, token_sims = compute_all_similarities(
                audio_feats, visual_feats
            )
            return compute_contrastive_loss(clip_sims, token_sims, self.temperature)
        else:
            return aggregate_similarities(audio_feats, visual_feats)


if __name__ == "__main__":
    key = jax.random.PRNGKey(0)
    k_frames, k_spec, k_params = jax.random.split(key, 3)

    B, C, H, W = 4, 3, 16, 16       # frames (B, C, H, W)
    T, F = 8, 16                    # spectrograms (B, T, F)

    frames = jax.random.normal(k_frames, (B, C, H, W), jnp.float32)
    spectrograms = jax.random.normal(k_spec, (B, T, F), jnp.float32)

    # embed_dim=128 keeps the token embedding lane-dense (full 128-lane vreg / MXU K).
    model = AudioVisualModelPallas(k_params, img_channels=C, patch=4,
                                   spec_bins=F, embed_dim=128, temperature=0.2)

    loss = model.forward(frames, spectrograms, training=True)       # scalar
    clip_sim = model.forward(frames, spectrograms, training=False)  # (B,)

    jax.block_until_ready((loss, clip_sim))
    assert loss.shape == () and clip_sim.shape == (B,)
    print("KERNEL_OK")
</pallas_src>

<mosaic_0001>
module attributes {stable_mosaic.version = 11 : i64} {
  func.func @_embed_norm_kernel(%arg0: i32, %arg1: memref<1xf32, #tpu.memory_space<smem>>, %arg2: memref<64x48xf32, #tpu.memory_space<vmem>>, %arg3: memref<48x128xf32, #tpu.memory_space<vmem>>, %arg4: memref<1x128xf32, #tpu.memory_space<vmem>>, %arg5: memref<64x128xf32, #tpu.memory_space<vmem>>) attributes {dimension_semantics = [#tpu.dimension_semantics<parallel>], iteration_bounds = array<i64: 1>, scalar_prefetch = 0 : i64, scratch_operands = 0 : i64, tpu.core_type = #tpu.core_type<tc>, window_params = [{transform_indices = @transform_0, window_bounds = array<i64: 1>}, {transform_indices = @transform_1, window_bounds = array<i64: 64, 48>}, {pipeline_mode = #tpu.pipeline_mode<synchronous>, transform_indices = @transform_2, window_bounds = array<i64: 48, 128>}, {pipeline_mode = #tpu.pipeline_mode<synchronous>, transform_indices = @transform_3, window_bounds = array<i64: 1, 128>}, {transform_indices = @transform_4, window_bounds = array<i64: 64, 128>}]} {
    %c0 = arith.constant 0 : index
    %c0_0 = arith.constant 0 : index
    %0 = vector.load %arg2[%c0, %c0_0] : memref<64x48xf32, #tpu.memory_space<vmem>>, vector<64x48xf32>
    %1 = arith.truncf %0 : vector<64x48xf32> to vector<64x48xbf16>
    %c0_1 = arith.constant 0 : index
    %c0_2 = arith.constant 0 : index
    %2 = vector.load %arg3[%c0_1, %c0_2] : memref<48x128xf32, #tpu.memory_space<vmem>>, vector<48x128xf32>
    %3 = arith.truncf %2 : vector<48x128xf32> to vector<48x128xbf16>
    %cst = arith.constant dense<0.000000e+00> : vector<64x128xf32>
    %4 = tpu.matmul %1, %3, %cst {dimension_numbers = #tpu.dot_dimension_numbers<[1], [0], [0], [1], [0, 0, 1, 1], [], []>} : vector<64x48xbf16>, vector<48x128xbf16>, vector<64x128xf32> -> vector<64x128xf32>
    %c0_3 = arith.constant 0 : index
    %c0_4 = arith.constant 0 : index
    %5 = vector.load %arg4[%c0_3, %c0_4] : memref<1x128xf32, #tpu.memory_space<vmem>>, vector<1x128xf32>
    %6 = vector.broadcast %5 : vector<1x128xf32> to vector<64x128xf32>
    %7 = arith.addf %4, %6 : vector<64x128xf32>
    %8 = arith.mulf %7, %7 : vector<64x128xf32>
    %cst_5 = arith.constant dense<0.000000e+00> : vector<64xf32>
    %9 = vector.multi_reduction <add>, %8, %cst_5 [1] : vector<64x128xf32> to vector<64xf32>
    %10 = vector.shape_cast %9 : vector<64xf32> to vector<64x1xf32>
    %cst_6 = arith.constant 1.000000e-24 : f32
    %11 = vector.broadcast %cst_6 : f32 to vector<64x1xf32>
    %12 = arith.maximumf %10, %11 : vector<64x1xf32>
    %13 = math.rsqrt %12 : vector<64x1xf32>
    %c0_7 = arith.constant 0 : index
    %14 = memref.load %arg1[%c0_7] : memref<1xf32, #tpu.memory_space<smem>>
    %15 = vector.broadcast %14 : f32 to vector<64x1xf32>
    %16 = arith.mulf %13, %15 : vector<64x1xf32>
    %17 = vector.broadcast %16 : vector<64x1xf32> to vector<64x128xf32>
    %18 = arith.mulf %7, %17 : vector<64x128xf32>
    %c0_8 = arith.constant 0 : index
    %c0_9 = arith.constant 0 : index
    %19 = vector.load %arg5[%c0_8, %c0_9] : memref<64x128xf32, #tpu.memory_space<vmem>>, vector<64x128xf32>
    tpu.vector_store %arg5[%c0_8, %c0_9], %18 {strides = array<i32>} : memref<64x128xf32, #tpu.memory_space<vmem>>, vector<64x128xf32>,
    return
  }
  func.func @transform_0(%arg0: i32) -> i32 {
    %c0_i32 = arith.constant 0 : i32
    %c0_i32_0 = arith.constant 0 : i32
    return %c0_i32 : i32
  }
  func.func @transform_1(%arg0: i32) -> (i32, i32) {
    %c0_i32 = arith.constant 0 : i32
    %c0_i32_0 = arith.constant 0 : i32
    return %arg0, %c0_i32 : i32, i32
  }
  func.func @transform_2(%arg0: i32) -> (i32, i32) {
    %c0_i32 = arith.constant 0 : i32
    %c0_i32_0 = arith.constant 0 : i32
    %c0_i32_1 = arith.constant 0 : i32
    return %c0_i32, %c0_i32_0 : i32, i32
  }
  func.func @transform_3(%arg0: i32) -> (i32, i32) {
    %c0_i32 = arith.constant 0 : i32
    %c0_i32_0 = arith.constant 0 : i32
    %c0_i32_1 = arith.constant 0 : i32
    return %c0_i32, %c0_i32_0 : i32, i32
  }
  func.func @transform_4(%arg0: i32) -> (i32, i32) {
    %c0_i32 = arith.constant 0 : i32
    %c0_i32_0 = arith.constant 0 : i32
    return %arg0, %c0_i32 : i32, i32
  }
}

</mosaic_0001>

<bundles_post_ra>
// kernel: tpu_custom_call.1
= control target key start
LH: loop header
LB: loop body
LE: loop exit
PB: predicated region body
PF: predicated region fallthrough
CT: control target
= control target key end

     0   :  { %vm48_vm0 = vcmask 392192   ;;  %s390_s0 = inlined_call_operand.<no memory space> [shape: f32[1], index: 0, kind: input, shape index: {}]   ;;  %s391_s1 = inlined_call_operand.vmem [shape: f32[64,48], index: 1, kind: input, shape index: {}]   ;;  %s392_s2 = inlined_call_operand.vmem [shape: f32[48,128], index: 2, kind: input, shape index: {}]   ;;  %s393_s3 = inlined_call_operand.vmem [shape: f32[1,128], index: 3, kind: input, shape index: {}]   ;;  %s394_s4 = inlined_call_operand.hbm [shape: f32[64,128], index: 4, kind: output, shape index: {}]  }
   0x1   :  { %v32_v0 = vld [vmem:[%s392_s2] sm:$0xff]  ;;  %v33_v1 = vld [vmem:[%s392_s2 + $0x8] sm:$0xff]  ;;  %v34_v2 = vld [vmem:[%s392_s2 + $0x10] sm:$0xff] }
   0x2   :  { %v38_v3 = vpack.c.bf16 %v33_v1, %v32_v0  ;;  %v35_v4 = vld [vmem:[%s392_s2 + $0x18] sm:$0xff]  ;;  %v36_v5 = vld [vmem:[%s392_s2 + $0x20] sm:$0xff]  ;;  %v37_v7 = vld [vmem:[%s392_s2 + $0x28] sm:$0xff] }
   0x3   :  { %v39_v6 = vpack.c.bf16 %v35_v4, %v34_v2  ;;  %v20_v8 = vld [vmem:[%s391_s1] sm:$0xff]  ;;  %v21_v9 = vld [vmem:[%s391_s1 + $0x8] sm:$0xff] }
   0x4   :  { %220 = vmatprep.subr.bf16.mxu0 %v38_v3  ;;  %234 = vmatprep.subr.bf16.mxu1 %v38_v3  ;;  %v28_v10 = vpack.c.bf16 %v21_v9, %v20_v8  ;;  %v24_v11 = vld [vmem:[%s391_s1 + $0x20] sm:$0xff]  ;;  %v25_v12 = vld [vmem:[%s391_s1 + $0x28] sm:$0xff] }
   0x5   :  { %221 = vmatpush3.bf16.msra.mxu0 %v38_v3  ;;  %237 = vmatpush3.bf16.msra.mxu1 %v38_v3  ;;  %v30_v13 = vpack.c.bf16 %v25_v12, %v24_v11 }
   0x6   :  { %10 = vsyncpa [#allocation4], 0  ;;  %222 = vmatprep.subr.bf16.mxu0 %v39_v6  ;;  %235 = vmatprep.subr.bf16.mxu1 %v39_v6  ;;  %v40_v14 = vpack.c.bf16 %v37_v7, %v36_v5  ;;  %v22_v15 = vld [vmem:[%s391_s1 + $0x10] sm:$0xff]  ;;  %v23_v16 = vld [vmem:[%s391_s1 + $0x18] sm:$0xff]  ;;  %v167_v58 = vstv %s390_s0  ;;  %s283_s0 = smov [#allocation3]  }
   0x7   :  { %226 = vmatprep.mubr.msk.bf16.mxu0 %vm48_vm0, %v28_v10  ;;  %230 = vmatprep.mubr.msk.bf16.mxu1 %vm48_vm0, %v30_v13  ;;  %v26_v17 = vld [vmem:[%s391_s1 + $0x30] sm:$0xff]  ;;  %v27_v18 = vld [vmem:[%s391_s1 + $0x38] sm:$0xff]  ;;  %v29_v19 = vpack.c.bf16 %v23_v16, %v22_v15  ;;  %v208_v21 = vld [vmem:[%s393_s3] ss:$0 sm:$0xff]  ;;  %s197_s18 = sshll.u32 %s283_s0, 4  ;;  %s198_s18 = int_to_ptr.vmem [resolvable:$true] %s197_s18 }
   0x8   :  { %v31_v20 = vpack.c.bf16 %v27_v18, %v26_v17  ;;  %s259_s19 = scalar_lea.vmem %s198_s18, 1024  ;;  %p264_p1 = scmp.lt.s32.totalorder %s198_s18, %s198_s18 }
   0x9   :  { %223 = vmatpush3.bf16.msra.mxu0 %v39_v6  ;;  %238 = vmatpush3.bf16.msra.mxu1 %v39_v6  ;;  %p260_p0 = scmp.ne.s32.totalorder %s198_s18, %s259_s19  ;;  %p265_p2 = scmp.lt.s32.totalorder %s259_s19, %s259_s19 }
   0xa   :  { %224 = vmatprep.subr.bf16.mxu0 %v40_v14  ;;  %236 = vmatprep.subr.bf16.mxu1 %v40_v14 }
   0xb   :  { %p266_p3 = por %p265_p2, %p264_p1 }
   0xd   :  { %225 = vmatpush3.bf16.msra.mxu0 %v40_v14  ;;  %239 = vmatpush3.bf16.msra.mxu1 %v40_v14  ;;  %p267_p4 = pnand %p266_p3, %p260_p0 }
  0x10   :  { %227 = vmatmul.mubr.msk.bf16.vlgmr.msra.gmra.mrb[0].mxu0 %vm48_vm0, %v29_v19  ;;  %231 = vmatmul.mubr.msk.bf16.vlgmr.msra.gmra.mrb[0].mxu1 %vm48_vm0, %v31_v20 }
  0xe3   :  { %v228_v22 = vpop.f32.mrb[0].mxu0  ;;  %v232_v23 = vpop.f32.mrb[0].mxu1 }
  0xe4   :  { %v104_v24 = vadd.f32 %v228_v22, %v208_v21  ;;  %v95_v25 = vpop.f32.mrb[1].mxu0  ;;  %v111_v26 = vpop.f32.mrb[1].mxu1  ;;  %v366_v42 = vadd.f32 %v232_v23, %v208_v21 }
  0xe5   :  { %v96_v27 = vadd.f32 %v208_v21, %v95_v25  ;;  %v229_v28 = vpop.f32.mrb[2].mxu0  ;;  %v360_v29 = vadd.f32 %v208_v21, %v111_v26  ;;  %v233_v30 = vpop.f32.mrb[2].mxu1 }
  0xe6   :  { %v107_v31 = vadd.f32 %v229_v28, %v208_v21  ;;  %v98_v32 = vpop.f32.mrb[3].mxu0  ;;  %v114_v33 = vpop.f32.mrb[3].mxu1  ;;  %v128_v34 = vmul.f32 %v104_v24, %v104_v24  ;;  %v364_v40 = vadd.f32 %v233_v30, %v208_v21  ;;  %v132_v45 = vmul.f32 %v366_v42, %v366_v42 }
  0xe7   :  { %v126_v35 = vmul.f32 %v96_v27, %v96_v27  ;;  %v130_v36 = vmul.f32 %v360_v29, %v360_v29  ;;  %v115_v37 = vadd.f32 %v208_v21, %v114_v33  ;;  %v99_v39 = vadd.f32 %v208_v21, %v98_v32 }
  0xe8   :  { %138 = vadd.xlane.f32.xlu1 %v128_v34  ;;  %v129_v38 = vmul.f32 %v107_v31, %v107_v31  ;;  %v133_v44 = vmul.f32 %v364_v40, %v364_v40 }
  0xe9   :  { %134 = vadd.xlane.f32.xlu0 %v126_v35  ;;  %v131_v41 = vmul.f32 %v115_v37, %v115_v37  ;;  %v127_v43 = vmul.f32 %v99_v39, %v99_v39 }
  0xec   :  { %140 = vadd.xlane.f32.xlu1 %v129_v38 }
  0xed   :  { %142 = vadd.xlane.f32.xlu0 %v130_v36 }
  0xf0   :  { %144 = vadd.xlane.f32.xlu1 %v131_v41 }
  0xf1   :  { %136 = vadd.xlane.f32.xlu0 %v127_v43 }
  0xf4   :  { %148 = vadd.xlane.f32.xlu1 %v133_v44 }
  0xf5   :  { %146 = vadd.xlane.f32.xlu0 %v132_v45 }
 0x175   :  { %v139_v46 = vpop.xlane.xlu1 %138 }
 0x176   :  { %v152_v47 = vmax.f32 %v139_v46, 1e-24  ;;  %v135_v48 = vpop.xlane.xlu0 %134 }
 0x177   :  { %v150_v49 = vmax.f32 %v135_v48, 1e-24 }
 0x178   :  { %243 = vrsqrt.f32 %v152_v47 }
 0x179   :  { %245 = vrsqrt.f32 %v150_v49  ;;  %v141_v50 = vpop.xlane.xlu1 %140 }
 0x17a   :  { %v153_v51 = vmax.f32 %v141_v50, 1e-24  ;;  %v143_v52 = vpop.xlane.xlu0 %142 }
 0x17b   :  { %v154_v53 = vmax.f32 %v143_v52, 1e-24 }
 0x17c   :  { %247 = vrsqrt.f32 %v153_v51 }
 0x17d   :  { %249 = vrsqrt.f32 %v154_v53  ;;  %v145_v54 = vpop.xlane.xlu1 %144 }
 0x17e   :  { %v155_v55 = vmax.f32 %v145_v54, 1e-24  ;;  %v137_v56 = vpop.xlane.xlu0 %136 }
 0x17f   :  { %v151_v57 = vmax.f32 %v137_v56, 1e-24 }
 0x180   :  { %251 = vrsqrt.f32 %v155_v55 }
 0x181   :  { %253 = vrsqrt.f32 %v151_v57  ;;  %v149_v59 = vpop.xlane.xlu1 %148 }
 0x182   :  { %v244_v60 = vpop.eup %243  ;;  %v157_v61 = vmax.f32 %v149_v59, 1e-24  ;;  %v147_v62 = vpop.xlane.xlu0 %146 }
 0x183   :  { %v246_v63 = vpop.eup %245  ;;  %v170_v0 = vmul.f32 %v244_v60, %v167_v58  ;;  %v156_v1 = vmax.f32 %v147_v62, 1e-24 }
 0x184   :  { %v168_v2 = vmul.f32 %v246_v63, %v167_v58  ;;  %255 = vrsqrt.f32 %v157_v61 }
 0x185   :  { %v178_v3 = vmul.f32 %v170_v0, %v104_v24  ;;  %257 = vrsqrt.f32 %v156_v1 }
 0x186   :  { %v248_v4 = vpop.eup %247  ;;  %v176_v5 = vmul.f32 %v168_v2, %v96_v27 }
 0x187   :  { %v250_v6 = vpop.eup %249  ;;  %186 = vst [vmem:[#allocation3 + $0x10] sm:$0xff] %v178_v3  ;;  %v171_v7 = vmul.f32 %v248_v4, %v167_v58 }
 0x188   :  { %184 = vst [vmem:[#allocation3] sm:$0xff] %v176_v5  ;;  %v172_v8 = vmul.f32 %v250_v6, %v167_v58 }
 0x189   :  { %v179_v9 = vmul.f32 %v171_v7, %v107_v31 }
 0x18a   :  { %v252_v10 = vpop.eup %251  ;;  %v180_v11 = vmul.f32 %v172_v8, %v360_v29 }
 0x18b   :  { %v254_v12 = vpop.eup %253  ;;  %187 = vst [vmem:[#allocation3 + $0x18] sm:$0xff] %v179_v9  ;;  %v173_v13 = vmul.f32 %v252_v10, %v167_v58 }
 0x18c   :  { %188 = vst [vmem:[#allocation3 + $0x20] sm:$0xff] %v180_v11  ;;  %v169_v14 = vmul.f32 %v254_v12, %v167_v58 }
 0x18d   :  { %v181_v15 = vmul.f32 %v173_v13, %v115_v37 }
 0x18e   :  { %v256_v16 = vpop.eup %255  ;;  %v177_v17 = vmul.f32 %v169_v14, %v99_v39 }
 0x18f   :  { %v258_v18 = vpop.eup %257  ;;  %189 = vst [vmem:[#allocation3 + $0x28] sm:$0xff] %v181_v15  ;;  %v175_v19 = vmul.f32 %v256_v16, %v167_v58 }
 0x190   :  { %185 = vst [vmem:[#allocation3 + $0x8] sm:$0xff] %v177_v17  ;;  %v174_v20 = vmul.f32 %v258_v18, %v167_v58 }
 0x191   :  { %v183_v21 = vmul.f32 %v175_v19, %v364_v40 }
 0x192   :  { %v182_v22 = vmul.f32 %v174_v20, %v366_v42 }
 0x193   :  { %191 = vst [vmem:[#allocation3 + $0x38] sm:$0xff] %v183_v21 }
 0x194   :  { %190 = vst [vmem:[#allocation3 + $0x30] sm:$0xff] %v182_v22 }
 0x195   :  { %270 = shalt.err (!%p267_p4)
}
 0x196   :  { %s271_s22 = scalar_lea.hbm %s394_s4, 1024 }
 0x197   :  { %p272_p5 = scmp.ne.s32.totalorder %s394_s4, %s271_s22  ;;  %p275_p6 = scmp.lt.u32.totalorder %s271_s22, %s394_s4 }
 0x199   :  { %p277_p7 = pnand %p275_p6, %p272_p5 }
 0x19b   :  { %280 = shalt.err (!%p277_p7)
}
 0x19c   :  { %s284_s27 = smov 128   ;;  %s285_s28 = smov 8  }
 0x19d   :  { %203 = dma.vmem_to_hbm [thread:$0]  %s198_s18, 1024, %s394_s4, [#allocation4], %s284_s27, %s284_s27, %s285_s28  }
 0x19e   :  { %281 = dma.done.wait [#allocation4], 1024  }
 0x19f   :  { %282 = vsyncadd [#allocation4], 4294966272 }
 0x1a0   :  { %207 = vsyncpa [#allocation4], 1 }

</bundles_post_ra>
